<compile_context>
chip_gen: v6e
topology: v6e:2x2x1
jax: 0.10.0
libtpu: 0.0.40
codegen_flags: <defaults>
</compile_context>

<pallas_src>
import functools

import jax
import jax.numpy as jnp
from jax.experimental import pallas as pl
from jax.experimental.pallas import tpu as pltpu


# ----------------------------------------------------------------------------
# Pallas kernel: one grid step = (one batch element, one token tile)
#   fused:  (patches @ Wt) + bias  ->  LayerNorm(gamma, beta)
# ----------------------------------------------------------------------------
def _patch_embed_kernel(xp_ref, wt_ref, b_ref, g_ref, beta_ref, o_ref, *, eps):
    # xp_ref: (1, TN, K)   wt_ref: (K, E)   b/g/beta: (1, E)   o_ref: (1, TN, E)
    # MXU matmul; inputs may be bf16, accumulation is always f32.
    y = jnp.dot(xp_ref[0], wt_ref[...], preferred_element_type=jnp.float32)
    y = y + b_ref[...]                                    # conv bias, f32
    # LayerNorm over E (f32 math, matches nn.LayerNorm with biased variance).
    mu = jnp.mean(y, axis=-1, keepdims=True)
    var = jnp.mean((y - mu) ** 2, axis=-1, keepdims=True)
    yn = (y - mu) * jax.lax.rsqrt(var + eps)
    o_ref[0] = (yn * g_ref[...] + beta_ref[...]).astype(o_ref.dtype)


# ----------------------------------------------------------------------------
# tiling helpers
# ----------------------------------------------------------------------------
def _pick_token_tile(n, max_tile=256, align=16):
    """Largest divisor of n that is <= max_tile and a multiple of `align`
    (16 keeps the sublane dim legal for both f32 and bf16 blocks)."""
    if n <= max_tile:
        return n
    for t in range(max_tile - (max_tile % align), 0, -align):
        if n % t == 0:
            return t
    return n  # fallback: whole token axis in one block


def _vmem_limit_bytes(tn, k, e, in_itemsize):
    # double-buffered input / weight / output blocks + f32 temporaries, 2x margin
    blocks = 2 * (tn * k + k * e) * in_itemsize + 2 * (tn * e + 3 * e) * 4
    temps = 4 * tn * e * 4
    est = 2 * (blocks + temps)
    # clamp: >= v5e default scoped (16 MiB), <= safe on v7x's 64 MiB physical
    return int(min(max(est, 32 * 1024 * 1024), 48 * 1024 * 1024))


# ----------------------------------------------------------------------------
# wrapper
# ----------------------------------------------------------------------------
def patch_embed_forward(x, params, *, patch_size, eps=1e-5,
                        compute_dtype=jnp.float32, max_token_tile=256):
    """x: (B, C, H, W) f32.  params: conv weight (E,C,ph,pw), conv bias (E,),
    LayerNorm gamma/beta (E,).  Returns ((B, N, E) f32, (H//ph, W//pw))."""
    B, C, H, W = x.shape
    ph, pw = patch_size
    assert H % ph == 0 and W % pw == 0, "img_size must be divisible by patch_size"
    Hp, Wp = H // ph, W // pw
    N = Hp * Wp
    K = C * ph * pw
    E = params["w"].shape[0]
    # TODO(synk): pad E to a multiple of 128 when it is not (the demo and the
    # module's default embed_dim=768 are already lane-dense).

    # --- trace-time layout plumbing (free: plain-JAX glue, not in the kernel) ---
    # im2col: (B,C,H,W) -> (B, N, C*ph*pw); flatten order (C, ph, pw) matches
    # the Conv2d OIHW weight layout, token order (Hp, Wp) matches flatten(2).
    xp = x.reshape(B, C, Hp, ph, Wp, pw).transpose(0, 2, 4, 1, 3, 5).reshape(B, N, K)
    wt = params["w"].reshape(E, K).T                        # pre-transposed (K, E)
    xp = xp.astype(compute_dtype)                           # bf16 halves DMA bytes
    wt = wt.astype(compute_dtype)
    bias = params["b"].reshape(1, E).astype(jnp.float32)
    gamma = params["gamma"].reshape(1, E).astype(jnp.float32)
    beta = params["beta"].reshape(1, E).astype(jnp.float32)

    TN = _pick_token_tile(N, max_token_tile)
    grid = (B, N // TN)
    kernel = functools.partial(_patch_embed_kernel, eps=eps)

    out = pl.pallas_call(
        kernel,
        out_shape=jax.ShapeDtypeStruct((B, N, E), jnp.float32),
        grid=grid,
        in_specs=[
            pl.BlockSpec((1, TN, K), lambda b, t: (b, t, 0)),   # patch tile
            pl.BlockSpec((K, E), lambda b, t: (0, 0)),          # weight (small,
            pl.BlockSpec((1, E), lambda b, t: (0, 0)),          #  constant block)
            pl.BlockSpec((1, E), lambda b, t: (0, 0)),
            pl.BlockSpec((1, E), lambda b, t: (0, 0)),
        ],
        out_specs=pl.BlockSpec((1, TN, E), lambda b, t: (b, t, 0)),
        compiler_params=pltpu.CompilerParams(
            dimension_semantics=("parallel", "parallel"),       # megacore on v7x
            vmem_limit_bytes=_vmem_limit_bytes(
                TN, K, E, jnp.dtype(compute_dtype).itemsize),
        ),
    )(xp, wt, bias, gamma, beta)
    return out, (Hp, Wp)


# ----------------------------------------------------------------------------
# deterministic parameter init (shapes implied by PatchEmbed.__init__)
# ----------------------------------------------------------------------------
def init_params(key, in_chans, embed_dim, patch_size):
    ph, pw = patch_size
    kw, kb, kg, kbt = jax.random.split(key, 4)
    return dict(
        w=jax.random.normal(kw, (embed_dim, in_chans, ph, pw), jnp.float32) * 0.02,
        b=jax.random.normal(kb, (embed_dim,), jnp.float32) * 0.02,
        gamma=1.0 + 0.1 * jax.random.normal(kg, (embed_dim,), jnp.float32),
        beta=0.05 * jax.random.normal(kbt, (embed_dim,), jnp.float32),
    )


# ----------------------------------------------------------------------------
# pure-JAX reference (mirrors the PyTorch forward) for a correctness check
# ----------------------------------------------------------------------------
def reference_forward(x, params, *, patch_size, eps=1e-5):
    ph, pw = patch_size
    y = jax.lax.conv_general_dilated(
        x, params["w"], window_strides=(ph, pw), padding="VALID",
        dimension_numbers=("NCHW", "OIHW", "NCHW"))
    y = y + params["b"].reshape(1, -1, 1, 1)
    B, E, Hp, Wp = y.shape
    y = y.reshape(B, E, Hp * Wp).transpose(0, 2, 1)          # flatten(2).transpose
    mu = jnp.mean(y, -1, keepdims=True)
    var = jnp.mean((y - mu) ** 2, -1, keepdims=True)
    y = (y - mu) / jnp.sqrt(var + eps) * params["gamma"] + params["beta"]
    return y, (Hp, Wp)


# ----------------------------------------------------------------------------
if __name__ == "__main__":
    B, C, H, W = 2, 4, 16, 16
    patch = 4
    embed_dim = 128          # multiple of 128 -> lane-dense output stores

    key = jax.random.PRNGKey(0)
    kx, kp = jax.random.split(key)
    x = jax.random.normal(kx, (B, C, H, W), jnp.float32)
    params = init_params(kp, C, embed_dim, (patch, patch))

    ref, (Hr, Wr) = reference_forward(x, params, patch_size=(patch, patch))

    # f32 MXU path: tight correctness check
    out, (Hp, Wp) = patch_embed_forward(x, params, patch_size=(patch, patch))
    out = jax.block_until_ready(out)
    assert (Hp, Wp) == (Hr, Wr) == (H // patch, W // patch)
    assert out.shape == (B, Hp * Wp, embed_dim)
    assert jnp.allclose(out, ref, atol=1e-4, rtol=1e-4), "f32 mismatch vs reference"

    # bf16 MXU path (f32 accumulation): looser tolerance
    out_bf, _ = patch_embed_forward(x, params, patch_size=(patch, patch),
                                    compute_dtype=jnp.bfloat16)
    out_bf = jax.block_until_ready(out_bf)
    assert jnp.allclose(out_bf, ref, atol=5e-2, rtol=5e-2), "bf16 mismatch vs reference"

    print("KERNEL_OK")
</pallas_src>

<mosaic_0001>
module attributes {stable_mosaic.version = 11 : i64} {
  func.func @_patch_embed_kernel(%arg0: i32, %arg1: i32, %arg2: memref<1x16x64xf32, #tpu.memory_space<vmem>>, %arg3: memref<64x128xf32, #tpu.memory_space<vmem>>, %arg4: memref<1x128xf32, #tpu.memory_space<vmem>>, %arg5: memref<1x128xf32, #tpu.memory_space<vmem>>, %arg6: memref<1x128xf32, #tpu.memory_space<vmem>>, %arg7: memref<1x16x128xf32, #tpu.memory_space<vmem>>) attributes {dimension_semantics = [#tpu.dimension_semantics<parallel>, #tpu.dimension_semantics<parallel>], iteration_bounds = array<i64: 2, 1>, scalar_prefetch = 0 : i64, scratch_operands = 0 : i64, tpu.core_type = #tpu.core_type<tc>, window_params = [{transform_indices = @transform_0, window_bounds = array<i64: 1, 16, 64>}, {pipeline_mode = #tpu.pipeline_mode<synchronous>, transform_indices = @transform_1, window_bounds = array<i64: 64, 128>}, {pipeline_mode = #tpu.pipeline_mode<synchronous>, transform_indices = @transform_2, window_bounds = array<i64: 1, 128>}, {pipeline_mode = #tpu.pipeline_mode<synchronous>, transform_indices = @transform_3, window_bounds = array<i64: 1, 128>}, {pipeline_mode = #tpu.pipeline_mode<synchronous>, transform_indices = @transform_4, window_bounds = array<i64: 1, 128>}, {transform_indices = @transform_5, window_bounds = array<i64: 1, 16, 128>}]} {
    %c0 = arith.constant 0 : index
    %c0_0 = arith.constant 0 : index
    %c0_1 = arith.constant 0 : index
    %0 = vector.load %arg2[%c0, %c0_0, %c0_1] : memref<1x16x64xf32, #tpu.memory_space<vmem>>, vector<1x16x64xf32>
    %1 = vector.shape_cast %0 : vector<1x16x64xf32> to vector<16x64xf32>
    %c0_2 = arith.constant 0 : index
    %c0_3 = arith.constant 0 : index
    %2 = vector.load %arg3[%c0_2, %c0_3] : memref<64x128xf32, #tpu.memory_space<vmem>>, vector<64x128xf32>
    %cst = arith.constant dense<0.000000e+00> : vector<16x128xf32>
    %3 = tpu.matmul %1, %2, %cst {dimension_numbers = #tpu.dot_dimension_numbers<[1], [0], [0], [1], [0, 0, 1, 1], [], []>} : vector<16x64xf32>, vector<64x128xf32>, vector<16x128xf32> -> vector<16x128xf32>
    %c0_4 = arith.constant 0 : index
    %c0_5 = arith.constant 0 : index
    %4 = vector.load %arg4[%c0_4, %c0_5] : memref<1x128xf32, #tpu.memory_space<vmem>>, vector<1x128xf32>
    %5 = vector.broadcast %4 : vector<1x128xf32> to vector<16x128xf32>
    %6 = arith.addf %3, %5 : vector<16x128xf32>
    %cst_6 = arith.constant dense<0.000000e+00> : vector<16xf32>
    %7 = vector.multi_reduction <add>, %6, %cst_6 [1] : vector<16x128xf32> to vector<16xf32>
    %8 = vector.shape_cast %7 : vector<16xf32> to vector<16x1xf32>
    %cst_7 = arith.constant 1.280000e+02 : f32
    %9 = vector.broadcast %cst_7 : f32 to vector<16x1xf32>
    %10 = arith.divf %8, %9 : vector<16x1xf32>
    %11 = vector.broadcast %10 : vector<16x1xf32> to vector<16x128xf32>
    %12 = arith.subf %6, %11 : vector<16x128xf32>
    %13 = arith.mulf %12, %12 : vector<16x128xf32>
    %cst_8 = arith.constant dense<0.000000e+00> : vector<16xf32>
    %14 = vector.multi_reduction <add>, %13, %cst_8 [1] : vector<16x128xf32> to vector<16xf32>
    %15 = vector.shape_cast %14 : vector<16xf32> to vector<16x1xf32>
    %cst_9 = arith.constant 1.280000e+02 : f32
    %16 = vector.broadcast %cst_9 : f32 to vector<16x1xf32>
    %17 = arith.divf %15, %16 : vector<16x1xf32>
    %18 = vector.broadcast %10 : vector<16x1xf32> to vector<16x128xf32>
    %19 = arith.subf %6, %18 : vector<16x128xf32>
    %cst_10 = arith.constant 9.99999974E-6 : f32
    %20 = vector.broadcast %cst_10 : f32 to vector<16x1xf32>
    %21 = arith.addf %17, %20 : vector<16x1xf32>
    %22 = math.rsqrt %21 : vector<16x1xf32>
    %23 = vector.broadcast %22 : vector<16x1xf32> to vector<16x128xf32>
    %24 = arith.mulf %19, %23 : vector<16x128xf32>
    %c0_11 = arith.constant 0 : index
    %c0_12 = arith.constant 0 : index
    %25 = vector.load %arg5[%c0_11, %c0_12] : memref<1x128xf32, #tpu.memory_space<vmem>>, vector<1x128xf32>
    %26 = vector.broadcast %25 : vector<1x128xf32> to vector<16x128xf32>
    %27 = arith.mulf %24, %26 : vector<16x128xf32>
    %c0_13 = arith.constant 0 : index
    %c0_14 = arith.constant 0 : index
    %28 = vector.load %arg6[%c0_13, %c0_14] : memref<1x128xf32, #tpu.memory_space<vmem>>, vector<1x128xf32>
    %29 = vector.broadcast %28 : vector<1x128xf32> to vector<16x128xf32>
    %30 = arith.addf %27, %29 : vector<16x128xf32>
    %c0_15 = arith.constant 0 : index
    %c0_16 = arith.constant 0 : index
    %c0_17 = arith.constant 0 : index
    %31 = vector.load %arg7[%c0_15, %c0_16, %c0_17] : memref<1x16x128xf32, #tpu.memory_space<vmem>>, vector<1x16x128xf32>
    %32 = vector.shape_cast %31 : vector<1x16x128xf32> to vector<16x128xf32>
    %33 = vector.shape_cast %30 : vector<16x128xf32> to vector<1x16x128xf32>
    tpu.vector_store %arg7[%c0_15, %c0_16, %c0_17], %33 {strides = array<i32>} : memref<1x16x128xf32, #tpu.memory_space<vmem>>, vector<1x16x128xf32>,
    return
  }
  func.func @transform_0(%arg0: i32, %arg1: i32) -> (i32, i32, i32) {
    %c0_i32 = arith.constant 0 : i32
    %c0_i32_0 = arith.constant 0 : i32
    return %arg0, %arg1, %c0_i32 : i32, i32, i32
  }
  func.func @transform_1(%arg0: i32, %arg1: i32) -> (i32, i32) {
    %c0_i32 = arith.constant 0 : i32
    %c0_i32_0 = arith.constant 0 : i32
    %c0_i32_1 = arith.constant 0 : i32
    return %c0_i32, %c0_i32_0 : i32, i32
  }
  func.func @transform_2(%arg0: i32, %arg1: i32) -> (i32, i32) {
    %c0_i32 = arith.constant 0 : i32
    %c0_i32_0 = arith.constant 0 : i32
    %c0_i32_1 = arith.constant 0 : i32
    return %c0_i32, %c0_i32_0 : i32, i32
  }
  func.func @transform_3(%arg0: i32, %arg1: i32) -> (i32, i32) {
    %c0_i32 = arith.constant 0 : i32
    %c0_i32_0 = arith.constant 0 : i32
    %c0_i32_1 = arith.constant 0 : i32
    return %c0_i32, %c0_i32_0 : i32, i32
  }
  func.func @transform_4(%arg0: i32, %arg1: i32) -> (i32, i32) {
    %c0_i32 = arith.constant 0 : i32
    %c0_i32_0 = arith.constant 0 : i32
    %c0_i32_1 = arith.constant 0 : i32
    return %c0_i32, %c0_i32_0 : i32, i32
  }
  func.func @transform_5(%arg0: i32, %arg1: i32) -> (i32, i32, i32) {
    %c0_i32 = arith.constant 0 : i32
    %c0_i32_0 = arith.constant 0 : i32
    return %arg0, %arg1, %c0_i32 : i32, i32, i32
  }
}

</mosaic_0001>

<bundles_post_ra>
// kernel: tpu_custom_call.1
= control target key start
LH: loop header
LB: loop body
LE: loop exit
PB: predicated region body
PF: predicated region fallthrough
CT: control target
= control target key end

     0   :  { %s1046_s0 = inlined_call_operand.hbm [shape: f32[2,16,64], index: 0, kind: input, shape index: {}]   ;;  %s1047_s1 = inlined_call_operand.hbm [shape: f32[64,128], index: 1, kind: input, shape index: {}]   ;;  %s1048_s2 = inlined_call_operand.vmem [shape: f32[1,128], index: 2, kind: input, shape index: {}]   ;;  %s1049_s3 = inlined_call_operand.vmem [shape: f32[1,128], index: 3, kind: input, shape index: {}]   ;;  %s1050_s4 = inlined_call_operand.vmem [shape: f32[1,128], index: 4, kind: input, shape index: {}]   ;;  %s1051_s5 = inlined_call_operand.hbm [shape: f32[2,16,128], index: 5, kind: output, shape index: {}]  }
   0x1   :  { %1056 = sst [smem:[#allocation12_spill]] %s1047_s1 }
   0x2   :  { %10 = vsyncpa [#allocation3], 0 }
   0x3   :  { %12 = vsyncpa [#allocation3 + $0x1], 0 }
   0x4   :  { %13 = vsyncpa [#allocation6], 0 }
   0x5   :  { %14 = vsyncpa [#allocation4], 0 }
   0x6   :  { %16 = vsyncpa [#allocation4 + $0x1], 0  ;;  %s844_s18 = smov 0   ;;  %s846_s19 = smov 0  }
   0x7   :  { %s848_s20 = smov 0   ;;  %s850_s21 = smov 0  }
   0x8   :  { %s852_s22 = smov 0   ;;  %s854_s23 = smov 0  }
   0x9 LB: > { %s533_s24 = sadd.s32 4294967295, %s805_s23   ;;  %s534_s25 = sadd.s32 4294967294, %s805_s23   ;;  %s805_s23 = sphi %s854_s23, %s22_s23   ;;  %s801_s22 = sphi %s852_s22, %s1078_s22   ;;  %s797_s21 = sphi %s850_s21, %s1077_s21   ;;  %s793_s20 = sphi %s848_s20, %s1076_s20   ;;  %s789_s19 = sphi %s846_s19, %s1075_s19   ;;  %s785_s18 = sphi %s844_s18, %s1074_s18  }
   0xa   : > { %p56_p0 = scmp.ne.s32.totalorder %s789_s19, %s785_s18  ;;  %p878_p1 = scmp.eq.s32.totalorder %s533_s24, 0 }
   0xb   : > { %p882_p2 = scmp.eq.s32.totalorder %s533_s24, 1  ;;  %p172_p3 = scmp.eq.s32.totalorder %s534_s25, 1 }
   0xc   : > { %p888_p4 = por %p878_p1, %p56_p0  ;;  %p535_p5 = scmp.ge.s32.totalorder %s805_s23, 1 }
   0xd   : > { %p893_p6 = por %p172_p3, %p56_p0  ;;  %p179_p7 = scmp.lt.s32.totalorder %s805_s23, 3 }
   0xe   : > { %s1059_s28 = scalar_select %p888_p4, 1, 0 }
   0xf   : > { %s1060_s29 = scalar_select %p893_p6, 1, 0 }
  0x10   : > { %p898_p8 = pnand %p535_p5, %p179_p7  ;;  %s807_s6 = smov [#allocation5]  }
  0x11   : > { %s191_s7 = sshll.u32 %s807_s6, 4  ;;  %s34_s9 = sadd.s32 1, %s801_s22  ;;  %s192_s7 = int_to_ptr.vmem [resolvable:$true] %s191_s7 }
  0x12   : > { %p594_p9 = pneg %p898_p8  ;;  %s678_s10 = scalar_lea.vmem %s192_s7, 1024 }
  0x13   : > { %p679_p13 = scmp.ne.s32.totalorder %s192_s7, %s678_s10  ;;  %p686_p5 = scmp.lt.s32.totalorder %s192_s7, %s192_s7 }
  0x14   : > { %p907_p11 = pnand %p594_p9, %p878_p1  ;;  %p687_p7 = scmp.lt.s32.totalorder %s678_s10, %s678_s10 }
  0x16   : > { %p669_p12 = pneg %p907_p11  ;;  %p688_p6 = por %p687_p7, %p686_p5 }
  0x18   : > { %p681_p0 = pnand %p679_p13, %p669_p12 }
  0x1a   : > { %p682_p3 = pneg %p681_p0 }
  0x1c   : > { %p689_p4 = pnand %p688_p6, %p682_p3 }
  0x1e   : > { %692 = shalt.err (!%p689_p4)
}
  0x1f   : > { %s1053_s11 = smov 128   ;;  %s1054_s12 = smov 8  }
  0x20   : > { %s1063_s1 = sld [smem:[#allocation12_spill]]  ;;  %p36_p4 = scmp.ge.s32.totalorder %s34_s9, 2 }
  0x21   : > { %s43_s15 = sadd.s32 1, %s793_s20  ;;  %p50_p6 = scmp.ne.s32.totalorder %s793_s20, %s789_s19 }
  0x22   : > { %p51_p9 = scmp.eq.s32.totalorder %s805_s23, 0  ;;  %s1080_s9 = smov (%p36_p4, %s34_s9), 0 }
  0x23   : > { %1064 = sst [smem:[#allocation11_spill]] %s1080_s9  ;;  %p934_p13 = por %p882_p2, %p50_p6 }
  0x24   : > { %p928_p12 = por %p51_p9, %p50_p6  ;;  %s38_s24 = ssub.s32 %s801_s22, %s1080_s9 }
  0x25   : > { %p607_p0 = scmp.lt.s32.totalorder %s805_s23, 2  ;;  %s214_s25 = sand.u32 1, %s793_s20  }
  0x26   : > { %597 = dma.hbm_to_vmem [thread:$0]  (!%p907_p11), %s1063_s1, 1024, %s192_s7, [#allocation6], %s1053_s11, %s1053_s11, %s1054_s12  }
  0x27   : > { %p41_p11 = scmp.eq.s32.totalorder %s38_s24, 0  ;;  %s538_s6 = sshll.u32 %s214_s25, 4 }
  0x28   : > { %s555_s8 = sshll.u32 %s801_s22, 8  ;;  %s218_s11 = scalar_lea.vmem [#allocation2], %s538_s6 }
  0x29   : > { %s943_s7 = scalar_select %p41_p11, %s793_s20, %s43_s15  }
  0x2a   : > { %s226_s14 = scalar_lea.hbm %s1046_s0, %s555_s8  ;;  %s227_s12 = sshll.u32 %s218_s11, 4  ;;  %s228_s12 = int_to_ptr.vmem [resolvable:$true] %s227_s12 }
  0x2b   : > { %p951_p2 = pnand %p607_p0, %p928_p12  ;;  %s215_s1 = scalar_lea.sflag [#allocation3], %s214_s25 }
  0x2c   : > { %s706_s24 = scalar_lea.vmem %s228_s12, 256  ;;  %s810_s15 = smov [#allocation2]  }
  0x2d   : > { %p695_p3 = pneg %p951_p2  ;;  %p707_p5 = scmp.ne.s32.totalorder %s228_s12, %s706_s24 }
  0x2e   : > { %s711_s9 = sshll.u32 %s810_s15, 4  ;;  %s712_s9 = int_to_ptr.vmem [resolvable:$false] %s711_s9 }
  0x2f   : > { %p709_p7 = pnand %p707_p5, %p695_p3  ;;  %s713_s8 = scalar_lea.vmem %s712_s9, 512 }
  0x30   : > { %p714_p6 = scmp.lt.s32.totalorder %s228_s12, %s712_s9  ;;  %p715_p9 = scmp.lt.s32.totalorder %s713_s8, %s706_s24 }
  0x31   : > { %p710_p4 = pneg %p709_p7 }
  0x32   : > { %p716_p11 = por %p715_p9, %p714_p6 }
  0x34   : > { %p717_p10 = pnand %p716_p11, %p710_p4 }
  0x36   : > { %720 = shalt.err (!%p717_p10)
}
  0x37   : > { %s1068_s11 = smov 8   ;;  %s1069_s16 = smov 128  }
  0x38   : > { %601 = dma.hbm_to_vmem [thread:$0]  (!%p951_p2), %s226_s14, 256, %s228_s12, %s215_s1, %s1069_s16, %s1069_s16, %s1068_s11  }
  0x39   : > { %239 = sbr.rel (%p898_p8) target bundleno = 603 (0x25b), region = 40  ;;  %s965_s25 = sand.u32 (!%p898_p8), 1, %s789_s19  }
  0x3a   : > { %s542_s9 = sshll.u32 (!%p898_p8), %s965_s25, 4  ;;  %s242_s6 = scalar_lea.sflag (!%p898_p8), [#allocation3], %s965_s25 }
  0x3b   : > { %s245_s10 = scalar_lea.vmem (!%p898_p8), [#allocation2], %s542_s9  ;;  %p1070_p10 = scmp.ne.s32.totalorder (!%p898_p8), %s1059_s28, 0 }
  0x3e   : > { %772 = dma.done.wait (%p1070_p10), %s242_s6, 256  }
  0x3f   : > { %774 = vsyncadd (%p1070_p10), %s242_s6, 4294967040 }
  0x40   : > { %776 = dma.done.wait (%p878_p1), [#allocation6], 1024  }
  0x41   : > { %778 = vsyncadd (%p878_p1), [#allocation6], 4294966272  ;;  %v287_v0 = vld [vmem:[#allocation5 + $0x38] sm:$0xff]  ;;  %v286_v1 = vld [vmem:[#allocation5 + $0x30] sm:$0xff]  ;;  %vm295_vm0 = vcmask 523264   ;;  %s556_s14 = sshll.u32 %s797_s21, 8 }
  0x42   : > { %567 = vmatprep.subr.mxu0 %v287_v0  ;;  %v285_v2 = vld [vmem:[#allocation5 + $0x28] sm:$0xff]  ;;  %v278_v3 = vld [vmem:[%s245_s10] sm:$0xff]  ;;  %v283_v5 = vld [vmem:[#allocation5 + $0x18] sm:$0xff]  ;;  %s275_s27 = scalar_lea.vmem [#allocation7], %s542_s9  ;;  %s996_s11 = scalar_lea.hbm %s1051_s5, %s556_s14 }
  0x43   : > { %568 = vmatpush3.msra.mxu0 %v287_v0  ;;  %583 = vmatprep.mubr.msk.f32.mxu0 %vm295_vm0, %v278_v3  ;;  %v284_v4 = vld [vmem:[#allocation5 + $0x20] sm:$0xff]  ;;  %v282_v6 = vld [vmem:[#allocation5 + $0x10] sm:$0xff]  ;;  %v281_v7 = vld [vmem:[#allocation5 + $0x8] sm:$0xff]  ;;  %s436_s24 = sshll.u32 %s275_s27, 4  ;;  %s421_s16 = scalar_lea.sflag [#allocation4], %s965_s25  ;;  %s998_s24 = int_to_ptr.vmem [resolvable:$true] %s436_s24 }
  0x44   : > { %569 = vmatprep.subr.mxu0 %v286_v1  ;;  %v280_v8 = vld [vmem:[#allocation5] sm:$0xff]  ;;  %v279_v9 = vld [vmem:[%s245_s10 + $0x8] sm:$0xff]  ;;  %s721_s6 = scalar_lea.vmem %s998_s24, 256  ;;  %s811_s21 = smov [#allocation7]  }
  0x45   : > { %570 = vmatpush3.msra.mxu0 %v286_v1  ;;  %v545_v11 = vld [vmem:[%s1048_s2] ss:$0 sm:$0xff]  ;;  %p722_p1 = scmp.ne.s32.totalorder %s998_s24, %s721_s6  ;;  %s725_s9 = sshll.u32 %s811_s21, 4  ;;  %s726_s9 = int_to_ptr.vmem [resolvable:$false] %s725_s9 }
  0x46   : > { %571 = vmatprep.subr.mxu0 %v285_v2  ;;  %v548_v30 = vld [vmem:[%s1049_s3] ss:$0 sm:$0xff]  ;;  %s727_s10 = scalar_lea.vmem %s726_s9, 512  ;;  %p728_p0 = scmp.lt.s32.totalorder %s998_s24, %s726_s9 }
  0x47   : > { %572 = vmatpush3.msra.mxu0 %v285_v2  ;;  %v549_v32 = vld [vmem:[%s1050_s4] ss:$0 sm:$0xff]  ;;  %p723_p8 = pnand %p722_p1, %p934_p13  ;;  %p729_p2 = scmp.lt.s32.totalorder %s727_s10, %s721_s6 }
  0x48   : > { %573 = vmatprep.subr.mxu0 %v284_v4 }
  0x49   : > { %574 = vmatpush3.msra.mxu0 %v284_v4  ;;  %p724_p12 = pneg %p723_p8  ;;  %p730_p3 = por %p729_p2, %p728_p0 }
  0x4a   : > { %575 = vmatprep.subr.mxu0 %v283_v5 }
  0x4b   : > { %576 = vmatpush3.msra.mxu0 %v283_v5  ;;  %p731_p5 = pnand %p730_p3, %p724_p12 }
  0x4c   : > { %577 = vmatprep.subr.mxu0 %v282_v6 }
  0x4d   : > { %578 = vmatpush3.msra.mxu0 %v282_v6 }
  0x4e   : > { %579 = vmatprep.subr.mxu0 %v281_v7 }
  0x4f   : > { %580 = vmatpush3.msra.mxu0 %v281_v7 }
  0x50   : > { %581 = vmatprep.subr.mxu0 %v280_v8 }
  0x51   : > { %582 = vmatpush3.msra.mxu0 %v280_v8 }
  0x52   : > { %584 = vmatmul.mubr.msk.f32.vlgmr.msra.gmra.mxu0 %vm295_vm0, %v279_v9 }
 0x112   : > { %v585_v10 = vpop.f32.mrf.mxu0 }
 0x113   : > { %v374_v14 = vadd.f32 %v585_v10, %v545_v11 }
 0x114   : > { %v368_v12 = vpop.f32.mrf.mxu0 }
 0x115   : > { %v369_v13 = vadd.f32 %v545_v11, %v368_v12 }
 0x117   : > { %377 = vadd.xlane.f32.xlu0 %v369_v13 }
 0x11b   : > { %379 = vadd.xlane.f32.xlu0 %v374_v14 }
 0x1a0   : > { %v378_v15 = vpop.xlane.xlu0 %377 }
 0x1a1   : > { %v382_v16 = vmul.f32 0.0078125, %v378_v15 }
 0x1a3   : > { %v384_v17 = vsub.f32 %v369_v13, %v382_v16 }
 0x1a4   : > { %v380_v18 = vpop.xlane.xlu0 %379 }
 0x1a5   : > { %v383_v19 = vmul.f32 0.0078125, %v380_v18  ;;  %v386_v20 = vmul.f32 %v384_v17, %v384_v17 }
 0x1a7   : > { %v385_v21 = vsub.f32 %v374_v14, %v383_v19  ;;  %388 = vadd.xlane.f32.xlu1 %v386_v20 }
 0x1a9   : > { %v387_v22 = vmul.f32 %v385_v21, %v385_v21 }
 0x1ab   : > { %390 = vadd.xlane.f32.xlu1 %v387_v22 }
 0x230   : > { %v389_v23 = vpop.xlane.xlu1 %388 }
 0x231   : > { %v392_v24 = vmul.f32 0.0078125, %v389_v23 }
 0x233   : > { %v394_v25 = vadd.f32 1e-05, %v392_v24 }
 0x234   : > { %v391_v26 = vpop.xlane.xlu1 %390 }
 0x235   : > { %663 = vrsqrt.f32 %v394_v25  ;;  %v393_v27 = vmul.f32 0.0078125, %v391_v26 }
 0x237   : > { %v395_v28 = vadd.f32 1e-05, %v393_v27 }
 0x239   : > { %665 = vrsqrt.f32 %v395_v28 }
 0x242   : > { %v664_v29 = vpop.eup %663 }
 0x243   : > { %v398_v31 = vmul.f32 %v664_v29, %v384_v17 }
 0x245   : > { %v407_v33 = vmul.f32 %v548_v30, %v398_v31 }
 0x246   : > { %v666_v34 = vpop.eup %665 }
 0x247   : > { %v416_v35 = vadd.f32 %v549_v32, %v407_v33  ;;  %v399_v36 = vmul.f32 %v666_v34, %v385_v21 }
 0x249   : > { %v408_v37 = vmul.f32 %v548_v30, %v399_v36  ;;  %418 = vst [vmem:[%s275_s27] sm:$0xff] %v416_v35 }
 0x24b   : > { %v417_v38 = vadd.f32 %v549_v32, %v408_v37 }
 0x24d   : > { %419 = vst [vmem:[%s275_s27 + $0x8] sm:$0xff] %v417_v38 }
 0x24e   : > { %734 = shalt.err (!%p731_p5)
}
 0x24f   : > { %s735_s1 = scalar_lea.hbm %s996_s11, 256  ;;  %s739_s30 = scalar_lea.hbm %s1051_s5, 512 }
 0x250   : > { %p736_p7 = scmp.ne.s32.totalorder %s996_s11, %s735_s1  ;;  %p740_p9 = scmp.lt.s32.totalorder %s996_s11, %s1051_s5 }
 0x251   : > { %p741_p11 = scmp.lt.s32.totalorder %s739_s30, %s735_s1 }
 0x252   : > { %p737_p4 = pnand %p736_p7, %p934_p13 }
 0x253   : > { %p742_p10 = por %p741_p11, %p740_p9 }
 0x254   : > { %p738_p6 = pneg %p737_p4 }
 0x256   : > { %p743_p1 = pnand %p742_p10, %p738_p6 }
 0x258   : > { %746 = shalt.err (!%p743_p1)
}
 0x259   : > { %s812_s14 = smov 128   ;;  %s813_s27 = smov 8  }
 0x25a   : > { %592 = dma.vmem_to_hbm [thread:$0]  (%p934_p13), %s998_s24, 256, %s996_s11, %s421_s16, %s812_s14, %s812_s14, %s813_s27  }
 0x25b PF: > { %s451_s15 = sand.u32 1, %s785_s18   ;;  %p1071_p8 = scmp.ne.s32.totalorder %s1060_s29, 0 }
 0x25c   : > { %p1072_p12 = scmp.ge.s32.totalorder %s805_s23, 2  ;;  %s452_s8 = scalar_lea.sflag [#allocation4], %s451_s15 }
 0x25e   : > { %p603_p0 = pnand %p1072_p12, %p1071_p8 }
 0x260   : > { %p604_p2 = pneg %p603_p0 }
 0x262   : > { %780 = dma.done.wait (%p604_p2), %s452_s8, 256  }
 0x263   : > { %782 = vsyncadd (%p604_p2), %s452_s8, 4294967040  ;;  %s22_s23 = sadd.s32 1, %s805_s23   ;;  %s1073_s17 = sld [smem:[#allocation11_spill]] }
 0x264   : > { %p19_p3 = scmp.ge.s32.totalorder %s22_s23, 4   ;;  %s1074_s18 = smov %s789_s19 }
 0x265   : > { %s1075_s19 = smov %s793_s20  ;;  %s1076_s20 = smov %s943_s7 }
 0x266   : > { %s1077_s21 = smov %s801_s22  ;;  %21 = sbr.rel (!%p19_p3) target bundleno = 9 (0x9), region = 89 }
 0x269   : > { %s1078_s22 = smov %s1073_s17 }
 0x26b   :  { %457 = vsyncpa [#allocation3], 1 }
 0x26c   :  { %459 = vsyncpa [#allocation3 + $0x1], 1 }
 0x26d   :  { %460 = vsyncpa [#allocation6], 1 }
 0x26e   :  { %461 = vsyncpa [#allocation4], 1 }
 0x26f   :  { %463 = vsyncpa [#allocation4 + $0x1], 1 }

</bundles_post_ra>
